<compile_context>
chip_gen: v5e
topology: v5e:2x2
jax: 0.10.0
libtpu: 0.0.40
codegen_flags: <defaults>
</compile_context>

<pallas_src>
import functools

import jax
import jax.numpy as jnp
from jax.experimental import pallas as pl
from jax.experimental.pallas import tpu as pltpu

HIDDEN = 100      # fixed by the module definition (fc1 out / fc2 in)
HID_PAD = 128     # hidden padded to a full lane width
LANES = 128       # lane width of the packed parameter slab
_ROW = 8          # sublane granularity


def _round_up(n, m):
    return ((n + m - 1) // m) * m


def pack_actor_params(w1, b1, w2, b2):
    """Pack fc1/fc2 weights + biases into one lane-dense (rows, 128) f32 slab.

    Row layout (section offsets are multiples of 8):
      [0, state_dim)                 : w1 (state_dim, HIDDEN), lane-padded to 128
      row sd_pad                     : b1 (lanes [0,HIDDEN)), lane HIDDEN == 1.0
      [sd_pad+8, sd_pad+8+HID_PAD)   : w2 (HIDDEN, action_dim) lane-padded;
                                       row HIDDEN of this section holds b2
    The 1.0 in b1's lane HIDDEN makes h[:, HIDDEN] == 1 after ReLU, so the
    second matmul picks up b2 from w2's row HIDDEN — the bias add is folded
    into the MXU pass.
    """
    state_dim = w1.shape[0]
    action_dim = w2.shape[1]
    sd_pad = _round_up(state_dim, _ROW)
    rows = sd_pad + _ROW + HID_PAD
    p = jnp.zeros((rows, LANES), jnp.float32)
    p = p.at[:state_dim, :HIDDEN].set(jnp.asarray(w1, jnp.float32))
    p = p.at[sd_pad, :HIDDEN].set(jnp.asarray(b1, jnp.float32).reshape(-1))
    p = p.at[sd_pad, HIDDEN].set(1.0)                       # bias lane for b2 fold
    w2_off = sd_pad + _ROW
    p = p.at[w2_off:w2_off + HIDDEN, :action_dim].set(jnp.asarray(w2, jnp.float32))
    p = p.at[w2_off + HIDDEN, :action_dim].set(jnp.asarray(b2, jnp.float32).reshape(-1))
    return p, sd_pad


def _actor_kernel(x_ref, p_ref, o_ref, *, state_dim, sd_pad, action_dim):
    # Static slices of the single VMEM-resident parameter slab.
    w1 = p_ref[0:state_dim, :]                      # (state_dim, 128)
    b1 = p_ref[sd_pad:sd_pad + 1, :]                # (1, 128), lane HIDDEN holds 1.0
    w2_off = sd_pad + _ROW
    w2 = p_ref[w2_off:w2_off + HID_PAD, :]          # (128, 128), row HIDDEN holds b2

    # fc1 + ReLU (MXU matmul, f32 accumulate). Padded lanes of w1/b1 are 0,
    # except lane HIDDEN which becomes exactly 1 after ReLU (b2 fold).
    h = jnp.dot(x_ref[...], w1, preferred_element_type=jnp.float32) + b1
    h = jnp.maximum(h, 0.0)

    # fc2 (b2 folded in via the constant-1 hidden lane) + 2*tanh.
    a = jnp.dot(h, w2, preferred_element_type=jnp.float32)
    o_ref[...] = (2.0 * jnp.tanh(a[:, :action_dim])).astype(o_ref.dtype)


def actor_apply(x, packed, *, state_dim, action_dim, sd_pad, tb=None):
    """x: (B, state_dim) f32; packed: slab from pack_actor_params."""
    B = x.shape[0]
    assert x.shape[1] == state_dim
    x = x.astype(jnp.float32)

    # Batch tile: multiple of 8, capped at 2048 rows; aim for >= 2 grid steps
    # so both v7x TensorCores get work (harmless elsewhere: ~0.35 us/step).
    if tb is None:
        tb = 8 if B <= 8 else min(2048, _round_up(pl.cdiv(B, 2), _ROW))
    tb = max(_ROW, _round_up(tb, _ROW))
    num_tiles = pl.cdiv(B, tb)

    # VMEM budget with lane-padded block footprints:
    #   x block and out block each occupy tb*128*4 bytes (double-buffered),
    #   plus kernel intermediates (h, a) and the resident parameter slab.
    params_bytes = packed.shape[0] * LANES * 4
    vmem_limit = int(min(48 * 1024 * 1024,
                         max(8 * 1024 * 1024,
                             12 * tb * LANES * 4 + 4 * params_bytes)))

    cost = pl.CostEstimate(
        flops=2 * B * (state_dim * HID_PAD + HID_PAD * LANES),
        transcendentals=B * action_dim,
        bytes_accessed=B * (state_dim + action_dim) * 4 + params_bytes,
    )

    kernel = functools.partial(
        _actor_kernel, state_dim=state_dim, sd_pad=sd_pad, action_dim=action_dim)

    return pl.pallas_call(
        kernel,
        out_shape=jax.ShapeDtypeStruct((B, action_dim), jnp.float32),
        grid=(num_tiles,),
        in_specs=[
            # x: tiled over batch, unpadded (last block dim == full array dim).
            pl.BlockSpec((tb, state_dim), lambda i: (i, 0)),
            # packed params: one full-array block, VMEM-resident across tiles.
            pl.BlockSpec(packed.shape, lambda i: (0, 0)),
        ],
        # narrow, contiguous output writeback (last block dim == full dim).
        out_specs=pl.BlockSpec((tb, action_dim), lambda i: (i, 0)),
        compiler_params=pltpu.CompilerParams(
            dimension_semantics=("parallel",),
            vmem_limit_bytes=vmem_limit,
        ),
        cost_estimate=cost,
    )(x, packed)


def make_actor(w1, b1, w2, b2, *, tb=None):
    """Pack parameters once and return a jitted forward(x) closure."""
    state_dim, action_dim = w1.shape[0], w2.shape[1]
    packed, sd_pad = pack_actor_params(w1, b1, w2, b2)

    @jax.jit
    def forward(x):
        return actor_apply(x, packed, state_dim=state_dim,
                           action_dim=action_dim, sd_pad=sd_pad, tb=tb)

    return forward


if __name__ == "__main__":
    batch, state_dim, action_dim = 8, 16, 4

    key = jax.random.PRNGKey(0)
    kx, k1, k2, k3, k4 = jax.random.split(key, 5)
    x = jax.random.normal(kx, (batch, state_dim), jnp.float32)
    # Weights ~ N(0, 0.3) as in the module; biases use PyTorch's default
    # Linear bias init U(-1/sqrt(fan_in), 1/sqrt(fan_in)).
    w1 = 0.3 * jax.random.normal(k1, (state_dim, HIDDEN), jnp.float32)
    b1 = jax.random.uniform(k2, (HIDDEN,), jnp.float32,
                            minval=-1.0 / jnp.sqrt(state_dim),
                            maxval=1.0 / jnp.sqrt(state_dim))
    w2 = 0.3 * jax.random.normal(k3, (HIDDEN, action_dim), jnp.float32)
    b2 = jax.random.uniform(k4, (action_dim,), jnp.float32,
                            minval=-1.0 / jnp.sqrt(HIDDEN),
                            maxval=1.0 / jnp.sqrt(HIDDEN))

    # Pure-JAX reference.
    def ref_fn(xx):
        h = jnp.maximum(xx @ w1 + b1, 0.0)
        return 2.0 * jnp.tanh(h @ w2 + b2)

    actor = make_actor(w1, b1, w2, b2)   # params packed once, reused per call

    # 1) Small batch: single grid step.
    out = actor(x)
    jax.block_until_ready(out)
    assert out.shape == (batch, action_dim)
    assert jnp.allclose(out, ref_fn(x), atol=1e-5, rtol=1e-5)

    # 2) Uneven batch: multiple grid steps + a partial boundary block.
    x2 = jax.random.normal(jax.random.PRNGKey(1), (20, state_dim), jnp.float32)
    out2 = actor(x2)
    jax.block_until_ready(out2)
    assert out2.shape == (20, action_dim)
    assert jnp.allclose(out2, ref_fn(x2), atol=1e-5, rtol=1e-5)

    print("KERNEL_OK")
</pallas_src>

<mosaic_0001>
module attributes {stable_mosaic.version = 11 : i64} {
  func.func @_actor_kernel(%arg0: i32, %arg1: memref<8x16xf32, #tpu.memory_space<vmem>>, %arg2: memref<152x128xf32, #tpu.memory_space<vmem>>, %arg3: memref<8x4xf32, #tpu.memory_space<vmem>>) attributes {dimension_semantics = [#tpu.dimension_semantics<parallel>], iteration_bounds = array<i64: 1>, scalar_prefetch = 0 : i64, scratch_operands = 0 : i64, tpu.core_type = #tpu.core_type<tc>, window_params = [{transform_indices = @transform_0, window_bounds = array<i64: 8, 16>}, {pipeline_mode = #tpu.pipeline_mode<synchronous>, transform_indices = @transform_1, window_bounds = array<i64: 152, 128>}, {transform_indices = @transform_2, window_bounds = array<i64: 8, 4>}]} {
    %c0 = arith.constant 0 : index
    %c0_0 = arith.constant 0 : index
    %0 = vector.load %arg2[%c0, %c0_0] : memref<152x128xf32, #tpu.memory_space<vmem>>, vector<16x128xf32>
    %c16 = arith.constant 16 : index
    %c0_1 = arith.constant 0 : index
    %1 = vector.load %arg2[%c16, %c0_1] : memref<152x128xf32, #tpu.memory_space<vmem>>, vector<1x128xf32>
    %c24 = arith.constant 24 : index
    %c0_2 = arith.constant 0 : index
    %2 = vector.load %arg2[%c24, %c0_2] : memref<152x128xf32, #tpu.memory_space<vmem>>, vector<128x128xf32>
    %c0_3 = arith.constant 0 : index
    %c0_4 = arith.constant 0 : index
    %3 = vector.load %arg1[%c0_3, %c0_4] : memref<8x16xf32, #tpu.memory_space<vmem>>, vector<8x16xf32>
    %cst = arith.constant dense<0.000000e+00> : vector<8x128xf32>
    %4 = tpu.matmul %3, %0, %cst {dimension_numbers = #tpu.dot_dimension_numbers<[1], [0], [0], [1], [0, 0, 1, 1], [], []>} : vector<8x16xf32>, vector<16x128xf32>, vector<8x128xf32> -> vector<8x128xf32>
    %5 = vector.broadcast %1 : vector<1x128xf32> to vector<8x128xf32>
    %6 = arith.addf %4, %5 : vector<8x128xf32>
    %cst_5 = arith.constant 0.000000e+00 : f32
    %7 = vector.broadcast %cst_5 : f32 to vector<8x128xf32>
    %8 = arith.maximumf %6, %7 : vector<8x128xf32>
    %cst_6 = arith.constant dense<0.000000e+00> : vector<8x128xf32>
    %9 = tpu.matmul %8, %2, %cst_6 {dimension_numbers = #tpu.dot_dimension_numbers<[1], [0], [0], [1], [0, 0, 1, 1], [], []>} : vector<8x128xf32>, vector<128x128xf32>, vector<8x128xf32> -> vector<8x128xf32>
    %10 = vector.extract_strided_slice %9 {offsets = [0, 0], sizes = [8, 4], strides = [1, 1]} : vector<8x128xf32> to vector<8x4xf32>
    %11 = math.tanh %10 : vector<8x4xf32>
    %cst_7 = arith.constant 2.000000e+00 : f32
    %12 = vector.broadcast %cst_7 : f32 to vector<8x4xf32>
    %13 = arith.mulf %12, %11 : vector<8x4xf32>
    %c0_8 = arith.constant 0 : index
    %c0_9 = arith.constant 0 : index
    %14 = vector.load %arg3[%c0_8, %c0_9] : memref<8x4xf32, #tpu.memory_space<vmem>>, vector<8x4xf32>
    tpu.vector_store %arg3[%c0_8, %c0_9], %13 {strides = array<i32>} : memref<8x4xf32, #tpu.memory_space<vmem>>, vector<8x4xf32>,
    return
  }
  func.func @transform_0(%arg0: i32) -> (i32, i32) {
    %c0_i32 = arith.constant 0 : i32
    %c0_i32_0 = arith.constant 0 : i32
    return %arg0, %c0_i32 : i32, i32
  }
  func.func @transform_1(%arg0: i32) -> (i32, i32) {
    %c0_i32 = arith.constant 0 : i32
    %c0_i32_0 = arith.constant 0 : i32
    %c0_i32_1 = arith.constant 0 : i32
    return %c0_i32, %c0_i32_0 : i32, i32
  }
  func.func @transform_2(%arg0: i32) -> (i32, i32) {
    %c0_i32 = arith.constant 0 : i32
    %c0_i32_0 = arith.constant 0 : i32
    return %arg0, %c0_i32 : i32, i32
  }
}

</mosaic_0001>

<bundles_post_ra>
// kernel: forward.1
= control target key start
LH: loop header
LB: loop body
LE: loop exit
PB: predicated region body
PF: predicated region fallthrough
CT: control target
= control target key end

     0   :  { %7 = vsyncpa [#allocation3], 0  ;;  %s205_s0 = inlined_call_operand.hbm [shape: f32[8,16], index: 0, kind: input, shape index: {}]   ;;  %s206_s1 = inlined_call_operand.hbm [shape: f32[152,128], index: 1, kind: input, shape index: {}]   ;;  %s207_s2 = inlined_call_operand.vmem [shape: f32[8,4], index: 2, kind: output, shape index: {}]  }
   0x1   :  { %s14_s11 = sshll.u32 %s205_s0, 4  ;;  %s15_s11 = int_to_ptr.hbm [resolvable:$true] %s14_s11 }
   0x2   :  { %8 = vsyncpa [#allocation5], 0  ;;  %s177_s12 = smov [#allocation2]   ;;  %s24_s16 = sshll.u32 %s206_s1, 4  ;;  %s25_s16 = int_to_ptr.hbm [resolvable:$true] %s24_s16 }
   0x3   :  { %s16_s13 = sshll.u32 %s177_s12, 4  ;;  %s178_s17 = smov [#allocation4]   ;;  %s17_s13 = int_to_ptr.vmem [resolvable:$true] %s16_s13 }
   0x4   :  { %19 = dma.hbm_to_vmem [thread:$0]  %s15_s11, 128, %s17_s13, [#allocation3]  }
   0x5   :  { %s26_s18 = sshll.u32 %s178_s17, 4  ;;  %s179_s19 = smov 128   ;;  %s27_s18 = int_to_ptr.vmem [resolvable:$true] %s26_s18 }
   0x6   :  { %s180_s20 = smov 8  }
   0x7   :  { %32 = dma.hbm_to_vmem [thread:$0]  %s25_s16, 2432, %s27_s18, [#allocation5], %s179_s19, %s179_s19, %s180_s20  }
   0x8   :  { %173 = dma.done.wait [#allocation3], 128  }
   0x9   :  { %174 = vsyncadd [#allocation3], 4294967168 }
   0xa   :  { %175 = dma.done.wait [#allocation5], 2432  }
   0xb   :  { %176 = vsyncadd [#allocation5], 4294964864  ;;  %v42_v0 = vld [vmem:[#allocation4 + $0x8] sm:$0xff]  ;;  %v41_v1 = vld [vmem:[#allocation4] sm:$0xff]  ;;  %vm62_vm0 = vcmask 130048   ;;  %vm109_vm1 = vcmask 31744  }
   0xc   :  { %80 = vmatpush.msra.mxu0 %v42_v0  ;;  %v60_v2 = vld [vmem:[#allocation2] sm:$0xff]  ;;  %v59_v3 = vld [vmem:[#allocation4 + $0x90] sm:$0xff]  ;;  %v58_v4 = vld [vmem:[#allocation4 + $0x88] sm:$0xff] }
   0xd   :  { %87 = vmatpush.msra.mxu1 %v59_v3  ;;  %v57_v5 = vld [vmem:[#allocation4 + $0x80] sm:$0xff]  ;;  %v56_v6 = vld [vmem:[#allocation4 + $0x78] sm:$0xff]  ;;  %v55_v7 = vld [vmem:[#allocation4 + $0x70] sm:$0xff] }
   0xe   :  { %81 = vmatpush.msra.mxu0 %v41_v1  ;;  %v54_v8 = vld [vmem:[#allocation4 + $0x68] sm:$0xff]  ;;  %v53_v9 = vld [vmem:[#allocation4 + $0x60] sm:$0xff]  ;;  %v52_v10 = vld [vmem:[#allocation4 + $0x58] sm:$0xff] }
   0xf   :  { %117 = vmatmul.msk.f32.vlgmr.msra.gmra.mxu0 %vm62_vm0, %v60_v2  ;;  %88 = vmatpush.msra.mxu1 %v58_v4  ;;  %v51_v11 = vld [vmem:[#allocation4 + $0x50] sm:$0xff]  ;;  %v50_v12 = vld [vmem:[#allocation4 + $0x48] sm:$0xff]  ;;  %v49_v13 = vld [vmem:[#allocation4 + $0x40] sm:$0xff] }
  0x10   :  { %v48_v14 = vld [vmem:[#allocation4 + $0x38] sm:$0xff]  ;;  %v47_v15 = vld [vmem:[#allocation4 + $0x30] sm:$0xff]  ;;  %v46_v16 = vld [vmem:[#allocation4 + $0x28] sm:$0xff] }
  0x11   :  { %89 = vmatpush.msra.mxu1 %v57_v5  ;;  %v45_v17 = vld [vmem:[#allocation4 + $0x20] sm:$0xff]  ;;  %v44_v18 = vld [vmem:[#allocation4 + $0x18] sm:$0xff]  ;;  %v122_v19 = vld [vmem:[#allocation4 + $0x10] ss:$0 sm:$0xff] }
  0x13   :  { %90 = vmatpush.msra.mxu1 %v56_v6 }
  0x15   :  { %91 = vmatpush.msra.mxu1 %v55_v7 }
  0x17   :  { %92 = vmatpush.msra.mxu1 %v54_v8 }
  0x19   :  { %93 = vmatpush.msra.mxu1 %v53_v9 }
  0x1b   :  { %94 = vmatpush.msra.mxu1 %v52_v10 }
  0x1d   :  { %95 = vmatpush.msra.mxu1 %v51_v11 }
  0x1f   :  { %96 = vmatpush.msra.mxu1 %v50_v12 }
  0x21   :  { %97 = vmatpush.msra.mxu1 %v49_v13 }
  0x23   :  { %98 = vmatpush.msra.mxu1 %v48_v14 }
  0x25   :  { %99 = vmatpush.msra.mxu1 %v47_v15 }
  0x27   :  { %100 = vmatpush.msra.mxu1 %v46_v16 }
  0x29   :  { %101 = vmatpush.msra.mxu1 %v45_v17 }
  0x2b   :  { %102 = vmatpush.msra.mxu1 %v44_v18 }
  0x8c   :  { %v83_v20 = vpop.f32.mrf.mxu0 }
  0x8d   :  { %v84_v21 = vadd.f32 %v122_v19, %v83_v20 }
  0x8f   :  { %v86_v22 = vmax.f32 %v84_v21, 0.0 }
  0x91   :  { %103 = vmatmul.f32.vlgmr.msra.gmra.mxu1 %v86_v22 }
 0x10e   :  { %v104_v23 = vpop.f32.mrf.mxu1 }
 0x10f   :  { %123 = vtanh.f32 %v104_v23 }
 0x115   :  { %v124_v24 = vpop.eup %123 }
 0x116   :  { %v108_v25 = vmul.f32 2.0, %v124_v24 }
 0x118   :  { %110 = vst.msk [vmem:[%s207_s2] sm:$0xff] %vm109_vm1, %v108_v25 }
 0x119   :  { %115 = vsyncpa [#allocation3], 1 }
 0x11a   :  { %116 = vsyncpa [#allocation5], 1 }

</bundles_post_ra>
